<compile_context>
chip_gen: v5e
topology: v5e:2x2
jax: 0.10.0
libtpu: 0.0.40
codegen_flags: <defaults>
</compile_context>

<pallas_src>
import jax
import jax.numpy as jnp
from jax.experimental import pallas as pl
from jax.experimental.pallas import tpu as pltpu

# Module hyper-parameters (small-but-consistent with the PyTorch module).
STATE_DIM = 17
ACTION_DIM = 6
TIME_DIM = 64
HIDDEN_DIM = 128          # module default is 512; shrunk for a small demo
NUM_DIFFUSION_STEPS = 100
N_BLOCKS = 4
LN_EPS = 1e-5

CAT_IN = STATE_DIM + STATE_DIM + ACTION_DIM    # [noisy | s | a] = 40
OUT_PAD = 128                                  # lane-dense padded output width


def _mish(x):
    # mish(x) = x * tanh(softplus(x)); clipped softplus -> 1 exp + 1 log1p + 1 tanh
    sp = jnp.where(x > 20.0, x, jnp.log1p(jnp.exp(jnp.minimum(x, 20.0))))
    return x * jnp.tanh(sp)


def diffusion_forward_kernel(
    t_ref, xin_ref,
    w_te1_ref, b_te1_ref, w_te2_ref, b_te2_ref,
    w_fused_ref, w_t2_ref, b_fused_ref,
    wb_ref, bb_ref, gamma_ref, beta_ref,
    w_out_ref, b_out_ref,
    out_ref,
):
    f32 = jnp.float32
    H = HIDDEN_DIM

    # ---- time encoding: Linear(1,64) -> Mish -> Linear(64,64) ----
    t = t_ref[...] * (1.0 / NUM_DIFFUSION_STEPS)                   # [TB,1]
    h = _mish(t * w_te1_ref[...] + b_te1_ref[...])                 # [TB,64] (K=1 as broadcast)
    time_emb = jnp.dot(h, w_te2_ref[...], preferred_element_type=f32) + b_te2_ref[...]

    # ---- single fused prologue matmul: [noisy|s|a] @ W_fused (K=40, N=2H) ----
    # columns [0:H]  -> noisy@W_in + s@Wc_s + a@Wc_a      (input-proj path)
    # columns [H:2H] ->               s@Wc_s + a@Wc_a      (cond path)
    # + one K=64, N=2H matmul adding time_emb@Wc_t to both halves,
    # + fused bias [b_in+b_c | b_c].
    big = (jnp.dot(xin_ref[...], w_fused_ref[...], preferred_element_type=f32)
           + jnp.dot(time_emb, w_t2_ref[...], preferred_element_type=f32)
           + b_fused_ref[...])                                     # [TB, 2H]
    x = big[:, :H]                                                 # lane-aligned slices
    cond = big[:, H:]

    # ---- 4 x (Linear -> LayerNorm -> Mish) + cond ----
    inv_h = 1.0 / H
    for i in range(N_BLOCKS):                                      # static unroll
        y = jnp.dot(x, wb_ref[i], preferred_element_type=f32) + bb_ref[i]
        # fused single-pass statistics: E[y], E[y^2]
        s1 = jnp.sum(y, axis=-1, keepdims=True)
        s2 = jnp.sum(y * y, axis=-1, keepdims=True)
        mu = s1 * inv_h
        var = s2 * inv_h - mu * mu
        y = (y - mu) * jax.lax.rsqrt(var + LN_EPS)
        y = y * gamma_ref[i] + beta_ref[i]
        x = _mish(y) + cond

    # ---- output projection (lane-dense, zero-padded to 128) ----
    out_ref[...] = jnp.dot(x, w_out_ref[...], preferred_element_type=f32) + b_out_ref[...]


def init_params(key):
    """Deterministic PyTorch-style init: U(-1/sqrt(fan_in), 1/sqrt(fan_in))."""
    def linear(key, fan_in, fan_out):
        kw, kb = jax.random.split(key)
        bound = 1.0 / jnp.sqrt(fan_in)
        w = jax.random.uniform(kw, (fan_in, fan_out), jnp.float32, -bound, bound)
        b = jax.random.uniform(kb, (1, fan_out), jnp.float32, -bound, bound)
        return w, b

    keys = jax.random.split(key, 16)
    p = {}
    p["w_te1"], p["b_te1"] = linear(keys[0], 1, TIME_DIM)
    p["w_te2"], p["b_te2"] = linear(keys[1], TIME_DIM, TIME_DIM)
    p["w_in"],  p["b_in"]  = linear(keys[2], STATE_DIM, HIDDEN_DIM)
    cond_in = STATE_DIM + ACTION_DIM + TIME_DIM
    p["w_c"],   p["b_c"]   = linear(keys[3], cond_in, HIDDEN_DIM)
    wb, bb = [], []
    for i in range(N_BLOCKS):
        w, b = linear(keys[4 + i], HIDDEN_DIM, HIDDEN_DIM)
        wb.append(w)
        bb.append(b)
    p["wb"] = jnp.stack(wb)                                        # [4,H,H]
    p["bb"] = jnp.stack(bb)                                        # [4,1,H]
    p["gamma"] = jnp.ones((N_BLOCKS, 1, HIDDEN_DIM), jnp.float32)
    p["beta"]  = jnp.zeros((N_BLOCKS, 1, HIDDEN_DIM), jnp.float32)
    p["w_out"], p["b_out"] = linear(keys[8], HIDDEN_DIM, STATE_DIM)
    return p


def diffusion_dynamics_forward(params, s_t, a_t, noisy_s_next, diffusion_step):
    B = s_t.shape[0]
    H = HIDDEN_DIM
    f32 = jnp.float32
    t = diffusion_step.astype(f32).reshape(B, 1)

    # ---- wrapper-side (plain JAX) weight folding ----------------------------
    wc = params["w_c"]
    wc_s = wc[:STATE_DIM]
    wc_a = wc[STATE_DIM:STATE_DIM + ACTION_DIM]
    wc_t = wc[STATE_DIM + ACTION_DIM:]

    zeros_h = jnp.zeros((STATE_DIM, H), f32)
    # rows: [noisy | s | a]; cols: [input-proj path | cond path]
    w_fused = jnp.concatenate([
        jnp.concatenate([params["w_in"], zeros_h], axis=1),
        jnp.concatenate([wc_s, wc_s], axis=1),
        jnp.concatenate([wc_a, wc_a], axis=1),
    ], axis=0)                                                      # [40, 2H]
    w_t2 = jnp.concatenate([wc_t, wc_t], axis=1)                    # [64, 2H]
    b_fused = jnp.concatenate(
        [params["b_in"] + params["b_c"], params["b_c"]], axis=1)    # [1, 2H]

    # lane-dense (padded) output projection
    w_out_pad = jnp.pad(params["w_out"], ((0, 0), (0, OUT_PAD - STATE_DIM)))
    b_out_pad = jnp.pad(params["b_out"], ((0, 0), (0, OUT_PAD - STATE_DIM)))

    # single activation slab for the fused prologue matmul
    xin = jnp.concatenate([noisy_s_next, s_t, a_t], axis=-1)        # [B, 40]

    # ---- grid / specs --------------------------------------------------------
    TB = B if B <= 512 else 512                                     # batch tile
    grid = (pl.cdiv(B, TB),)

    def act_spec(n_cols):
        return pl.BlockSpec((TB, n_cols), lambda i: (i, 0))

    def w_spec(arr):
        nd = arr.ndim
        return pl.BlockSpec(arr.shape, lambda i, _nd=nd: (0,) * _nd)

    inputs = (
        t, xin,
        params["w_te1"], params["b_te1"], params["w_te2"], params["b_te2"],
        w_fused, w_t2, b_fused,
        params["wb"], params["bb"], params["gamma"], params["beta"],
        w_out_pad, b_out_pad,
    )
    in_specs = [act_spec(1), act_spec(CAT_IN)] + [w_spec(a) for a in inputs[2:]]
    out_specs = pl.BlockSpec((TB, OUT_PAD), lambda i: (i, 0))

    flops = 2 * B * (
        1 * TIME_DIM + TIME_DIM * TIME_DIM        # time encoder
        + CAT_IN * 2 * H + TIME_DIM * 2 * H       # fused prologue
        + N_BLOCKS * H * H                        # residual blocks
        + H * OUT_PAD                             # output projection
    )
    transcendentals = 3 * B * (TIME_DIM + N_BLOCKS * H)
    bytes_accessed = sum(int(a.size) * 4 for a in inputs) + B * OUT_PAD * 4

    out_padded = pl.pallas_call(
        diffusion_forward_kernel,
        out_shape=jax.ShapeDtypeStruct((B, OUT_PAD), f32),
        grid=grid,
        in_specs=in_specs,
        out_specs=out_specs,
        compiler_params=pltpu.CompilerParams(dimension_semantics=("parallel",)),
        cost_estimate=pl.CostEstimate(
            flops=flops, transcendentals=transcendentals,
            bytes_accessed=bytes_accessed),
    )(*inputs)
    return out_padded[:, :STATE_DIM]


def reference_forward(params, s_t, a_t, noisy_s_next, diffusion_step):
    """Pure-JAX reference matching the PyTorch module exactly."""
    def mish(x):
        return x * jnp.tanh(jnp.logaddexp(x, 0.0))

    B = s_t.shape[0]
    t = diffusion_step.astype(jnp.float32).reshape(B, 1) / NUM_DIFFUSION_STEPS
    h = mish(t @ params["w_te1"] + params["b_te1"])
    time_emb = h @ params["w_te2"] + params["b_te2"]
    condition = jnp.concatenate([s_t, a_t, time_emb], axis=-1)
    cond = condition @ params["w_c"] + params["b_c"]
    x = noisy_s_next @ params["w_in"] + params["b_in"] + cond
    for i in range(N_BLOCKS):
        y = x @ params["wb"][i] + params["bb"][i]
        mu = jnp.mean(y, axis=-1, keepdims=True)
        var = jnp.mean((y - mu) ** 2, axis=-1, keepdims=True)
        y = (y - mu) / jnp.sqrt(var + LN_EPS) * params["gamma"][i] + params["beta"][i]
        x = mish(y) + cond
    return x @ params["w_out"] + params["b_out"]


if __name__ == "__main__":
    key = jax.random.PRNGKey(0)
    kp, ks, ka, kn, kd = jax.random.split(key, 5)

    B = 8
    params = init_params(kp)
    s_t = jax.random.normal(ks, (B, STATE_DIM), jnp.float32)
    a_t = jax.random.normal(ka, (B, ACTION_DIM), jnp.float32)
    noisy_s_next = jax.random.normal(kn, (B, STATE_DIM), jnp.float32)
    diffusion_step = jax.random.randint(kd, (B,), 0, NUM_DIFFUSION_STEPS)

    out = diffusion_dynamics_forward(params, s_t, a_t, noisy_s_next, diffusion_step)
    out = jax.block_until_ready(out)

    ref = reference_forward(params, s_t, a_t, noisy_s_next, diffusion_step)
    assert out.shape == (B, STATE_DIM)
    assert jnp.allclose(out, ref, atol=1e-4, rtol=1e-4), "mismatch vs pure-JAX reference"

    # TODO(synk): if forward is called 100x inside sample(), move the step loop
    # into one pallas_call (step grid axis, weights resident) to avoid per-call
    # weight re-DMA; not needed for a single forward.
    print("KERNEL_OK")
</pallas_src>

<mosaic_0001>
module attributes {stable_mosaic.version = 11 : i64} {
  func.func @diffusion_forward_kernel(%arg0: i32, %arg1: memref<8x1xf32, #tpu.memory_space<vmem>>, %arg2: memref<8x40xf32, #tpu.memory_space<vmem>>, %arg3: memref<1x64xf32, #tpu.memory_space<vmem>>, %arg4: memref<1x64xf32, #tpu.memory_space<vmem>>, %arg5: memref<64x64xf32, #tpu.memory_space<vmem>>, %arg6: memref<1x64xf32, #tpu.memory_space<vmem>>, %arg7: memref<40x256xf32, #tpu.memory_space<vmem>>, %arg8: memref<64x256xf32, #tpu.memory_space<vmem>>, %arg9: memref<1x256xf32, #tpu.memory_space<vmem>>, %arg10: memref<4x128x128xf32, #tpu.memory_space<vmem>>, %arg11: memref<4x1x128xf32, #tpu.memory_space<vmem>>, %arg12: memref<4x1x128xf32, #tpu.memory_space<vmem>>, %arg13: memref<4x1x128xf32, #tpu.memory_space<vmem>>, %arg14: memref<128x128xf32, #tpu.memory_space<vmem>>, %arg15: memref<1x128xf32, #tpu.memory_space<vmem>>, %arg16: memref<8x128xf32, #tpu.memory_space<vmem>>) attributes {dimension_semantics = [#tpu.dimension_semantics<parallel>], iteration_bounds = array<i64: 1>, scalar_prefetch = 0 : i64, scratch_operands = 0 : i64, tpu.core_type = #tpu.core_type<tc>, window_params = [{transform_indices = @transform_0, window_bounds = array<i64: 8, 1>}, {transform_indices = @transform_1, window_bounds = array<i64: 8, 40>}, {pipeline_mode = #tpu.pipeline_mode<synchronous>, transform_indices = @transform_2, window_bounds = array<i64: 1, 64>}, {pipeline_mode = #tpu.pipeline_mode<synchronous>, transform_indices = @transform_3, window_bounds = array<i64: 1, 64>}, {pipeline_mode = #tpu.pipeline_mode<synchronous>, transform_indices = @transform_4, window_bounds = array<i64: 64, 64>}, {pipeline_mode = #tpu.pipeline_mode<synchronous>, transform_indices = @transform_5, window_bounds = array<i64: 1, 64>}, {pipeline_mode = #tpu.pipeline_mode<synchronous>, transform_indices = @transform_6, window_bounds = array<i64: 40, 256>}, {pipeline_mode = #tpu.pipeline_mode<synchronous>, transform_indices = @transform_7, window_bounds = array<i64: 64, 256>}, {pipeline_mode = #tpu.pipeline_mode<synchronous>, transform_indices = @transform_8, window_bounds = array<i64: 1, 256>}, {pipeline_mode = #tpu.pipeline_mode<synchronous>, transform_indices = @transform_9, window_bounds = array<i64: 4, 128, 128>}, {pipeline_mode = #tpu.pipeline_mode<synchronous>, transform_indices = @transform_10, window_bounds = array<i64: 4, 1, 128>}, {pipeline_mode = #tpu.pipeline_mode<synchronous>, transform_indices = @transform_11, window_bounds = array<i64: 4, 1, 128>}, {pipeline_mode = #tpu.pipeline_mode<synchronous>, transform_indices = @transform_12, window_bounds = array<i64: 4, 1, 128>}, {pipeline_mode = #tpu.pipeline_mode<synchronous>, transform_indices = @transform_13, window_bounds = array<i64: 128, 128>}, {pipeline_mode = #tpu.pipeline_mode<synchronous>, transform_indices = @transform_14, window_bounds = array<i64: 1, 128>}, {transform_indices = @transform_15, window_bounds = array<i64: 8, 128>}]} {
    %c0 = arith.constant 0 : index
    %c0_0 = arith.constant 0 : index
    %0 = vector.load %arg1[%c0, %c0_0] : memref<8x1xf32, #tpu.memory_space<vmem>>, vector<8x1xf32>
    %cst = arith.constant 0.00999999977 : f32
    %1 = vector.broadcast %cst : f32 to vector<8x1xf32>
    %2 = arith.mulf %0, %1 : vector<8x1xf32>
    %c0_1 = arith.constant 0 : index
    %c0_2 = arith.constant 0 : index
    %3 = vector.load %arg3[%c0_1, %c0_2] : memref<1x64xf32, #tpu.memory_space<vmem>>, vector<1x64xf32>
    %4 = vector.broadcast %2 : vector<8x1xf32> to vector<8x64xf32>
    %5 = vector.broadcast %3 : vector<1x64xf32> to vector<8x64xf32>
    %6 = arith.mulf %4, %5 : vector<8x64xf32>
    %c0_3 = arith.constant 0 : index
    %c0_4 = arith.constant 0 : index
    %7 = vector.load %arg4[%c0_3, %c0_4] : memref<1x64xf32, #tpu.memory_space<vmem>>, vector<1x64xf32>
    %8 = vector.broadcast %7 : vector<1x64xf32> to vector<8x64xf32>
    %9 = arith.addf %6, %8 : vector<8x64xf32>
    %cst_5 = arith.constant 2.000000e+01 : f32
    %10 = vector.broadcast %cst_5 : f32 to vector<8x64xf32>
    %11 = arith.cmpf ogt, %9, %10 : vector<8x64xf32>
    %cst_6 = arith.constant 2.000000e+01 : f32
    %12 = vector.broadcast %cst_6 : f32 to vector<8x64xf32>
    %13 = arith.minimumf %9, %12 : vector<8x64xf32>
    %14 = math.exp %13 : vector<8x64xf32>
    %15 = math.log1p %14 : vector<8x64xf32>
    %16 = arith.select %11, %9, %15 : vector<8x64xi1>, vector<8x64xf32>
    %17 = math.tanh %16 : vector<8x64xf32>
    %18 = arith.mulf %9, %17 : vector<8x64xf32>
    %c0_7 = arith.constant 0 : index
    %c0_8 = arith.constant 0 : index
    %19 = vector.load %arg5[%c0_7, %c0_8] : memref<64x64xf32, #tpu.memory_space<vmem>>, vector<64x64xf32>
    %cst_9 = arith.constant dense<0.000000e+00> : vector<8x64xf32>
    %20 = tpu.matmul %18, %19, %cst_9 {dimension_numbers = #tpu.dot_dimension_numbers<[1], [0], [0], [1], [0, 0, 1, 1], [], []>} : vector<8x64xf32>, vector<64x64xf32>, vector<8x64xf32> -> vector<8x64xf32>
    %c0_10 = arith.constant 0 : index
    %c0_11 = arith.constant 0 : index
    %21 = vector.load %arg6[%c0_10, %c0_11] : memref<1x64xf32, #tpu.memory_space<vmem>>, vector<1x64xf32>
    %22 = vector.broadcast %21 : vector<1x64xf32> to vector<8x64xf32>
    %23 = arith.addf %20, %22 : vector<8x64xf32>
    %c0_12 = arith.constant 0 : index
    %c0_13 = arith.constant 0 : index
    %24 = vector.load %arg2[%c0_12, %c0_13] : memref<8x40xf32, #tpu.memory_space<vmem>>, vector<8x40xf32>
    %c0_14 = arith.constant 0 : index
    %c0_15 = arith.constant 0 : index
    %25 = vector.load %arg7[%c0_14, %c0_15] : memref<40x256xf32, #tpu.memory_space<vmem>>, vector<40x256xf32>
    %cst_16 = arith.constant dense<0.000000e+00> : vector<8x256xf32>
    %26 = tpu.matmul %24, %25, %cst_16 {dimension_numbers = #tpu.dot_dimension_numbers<[1], [0], [0], [1], [0, 0, 1, 1], [], []>} : vector<8x40xf32>, vector<40x256xf32>, vector<8x256xf32> -> vector<8x256xf32>
    %c0_17 = arith.constant 0 : index
    %c0_18 = arith.constant 0 : index
    %27 = vector.load %arg8[%c0_17, %c0_18] : memref<64x256xf32, #tpu.memory_space<vmem>>, vector<64x256xf32>
    %cst_19 = arith.constant dense<0.000000e+00> : vector<8x256xf32>
    %28 = tpu.matmul %23, %27, %cst_19 {dimension_numbers = #tpu.dot_dimension_numbers<[1], [0], [0], [1], [0, 0, 1, 1], [], []>} : vector<8x64xf32>, vector<64x256xf32>, vector<8x256xf32> -> vector<8x256xf32>
    %29 = arith.addf %26, %28 : vector<8x256xf32>
    %c0_20 = arith.constant 0 : index
    %c0_21 = arith.constant 0 : index
    %30 = vector.load %arg9[%c0_20, %c0_21] : memref<1x256xf32, #tpu.memory_space<vmem>>, vector<1x256xf32>
    %31 = vector.broadcast %30 : vector<1x256xf32> to vector<8x256xf32>
    %32 = arith.addf %29, %31 : vector<8x256xf32>
    %33 = vector.extract_strided_slice %32 {offsets = [0, 0], sizes = [8, 128], strides = [1, 1]} : vector<8x256xf32> to vector<8x128xf32>
    %34 = vector.extract_strided_slice %32 {offsets = [0, 128], sizes = [8, 128], strides = [1, 1]} : vector<8x256xf32> to vector<8x128xf32>
    %c0_22 = arith.constant 0 : index
    %c0_23 = arith.constant 0 : index
    %c0_24 = arith.constant 0 : index
    %35 = vector.load %arg10[%c0_22, %c0_23, %c0_24] : memref<4x128x128xf32, #tpu.memory_space<vmem>>, vector<1x128x128xf32>
    %36 = vector.shape_cast %35 : vector<1x128x128xf32> to vector<128x128xf32>
    %cst_25 = arith.constant dense<0.000000e+00> : vector<8x128xf32>
    %37 = tpu.matmul %33, %36, %cst_25 {dimension_numbers = #tpu.dot_dimension_numbers<[1], [0], [0], [1], [0, 0, 1, 1], [], []>} : vector<8x128xf32>, vector<128x128xf32>, vector<8x128xf32> -> vector<8x128xf32>
    %c0_26 = arith.constant 0 : index
    %c0_27 = arith.constant 0 : index
    %c0_28 = arith.constant 0 : index
    %38 = vector.load %arg11[%c0_26, %c0_27, %c0_28] : memref<4x1x128xf32, #tpu.memory_space<vmem>>, vector<1x1x128xf32>
    %39 = vector.shape_cast %38 : vector<1x1x128xf32> to vector<1x128xf32>
    %40 = vector.broadcast %39 : vector<1x128xf32> to vector<8x128xf32>
    %41 = arith.addf %37, %40 : vector<8x128xf32>
    %cst_29 = arith.constant dense<0.000000e+00> : vector<8xf32>
    %42 = vector.multi_reduction <add>, %41, %cst_29 [1] : vector<8x128xf32> to vector<8xf32>
    %43 = vector.shape_cast %42 : vector<8xf32> to vector<8x1xf32>
    %44 = arith.mulf %41, %41 : vector<8x128xf32>
    %cst_30 = arith.constant dense<0.000000e+00> : vector<8xf32>
    %45 = vector.multi_reduction <add>, %44, %cst_30 [1] : vector<8x128xf32> to vector<8xf32>
    %46 = vector.shape_cast %45 : vector<8xf32> to vector<8x1xf32>
    %cst_31 = arith.constant 7.812500e-03 : f32
    %47 = vector.broadcast %cst_31 : f32 to vector<8x1xf32>
    %48 = arith.mulf %43, %47 : vector<8x1xf32>
    %cst_32 = arith.constant 7.812500e-03 : f32
    %49 = vector.broadcast %cst_32 : f32 to vector<8x1xf32>
    %50 = arith.mulf %46, %49 : vector<8x1xf32>
    %51 = arith.mulf %48, %48 : vector<8x1xf32>
    %52 = arith.subf %50, %51 : vector<8x1xf32>
    %53 = vector.broadcast %48 : vector<8x1xf32> to vector<8x128xf32>
    %54 = arith.subf %41, %53 : vector<8x128xf32>
    %cst_33 = arith.constant 9.99999974E-6 : f32
    %55 = vector.broadcast %cst_33 : f32 to vector<8x1xf32>
    %56 = arith.addf %52, %55 : vector<8x1xf32>
    %57 = math.rsqrt %56 : vector<8x1xf32>
    %58 = vector.broadcast %57 : vector<8x1xf32> to vector<8x128xf32>
    %59 = arith.mulf %54, %58 : vector<8x128xf32>
    %c0_34 = arith.constant 0 : index
    %c0_35 = arith.constant 0 : index
    %c0_36 = arith.constant 0 : index
    %60 = vector.load %arg12[%c0_34, %c0_35, %c0_36] : memref<4x1x128xf32, #tpu.memory_space<vmem>>, vector<1x1x128xf32>
    %61 = vector.shape_cast %60 : vector<1x1x128xf32> to vector<1x128xf32>
    %62 = vector.broadcast %61 : vector<1x128xf32> to vector<8x128xf32>
    %63 = arith.mulf %59, %62 : vector<8x128xf32>
    %c0_37 = arith.constant 0 : index
    %c0_38 = arith.constant 0 : index
    %c0_39 = arith.constant 0 : index
    %64 = vector.load %arg13[%c0_37, %c0_38, %c0_39] : memref<4x1x128xf32, #tpu.memory_space<vmem>>, vector<1x1x128xf32>
    %65 = vector.shape_cast %64 : vector<1x1x128xf32> to vector<1x128xf32>
    %66 = vector.broadcast %65 : vector<1x128xf32> to vector<8x128xf32>
    %67 = arith.addf %63, %66 : vector<8x128xf32>
    %cst_40 = arith.constant 2.000000e+01 : f32
    %68 = vector.broadcast %cst_40 : f32 to vector<8x128xf32>
    %69 = arith.cmpf ogt, %67, %68 : vector<8x128xf32>
    %cst_41 = arith.constant 2.000000e+01 : f32
    %70 = vector.broadcast %cst_41 : f32 to vector<8x128xf32>
    %71 = arith.minimumf %67, %70 : vector<8x128xf32>
    %72 = math.exp %71 : vector<8x128xf32>
    %73 = math.log1p %72 : vector<8x128xf32>
    %74 = arith.select %69, %67, %73 : vector<8x128xi1>, vector<8x128xf32>
    %75 = math.tanh %74 : vector<8x128xf32>
    %76 = arith.mulf %67, %75 : vector<8x128xf32>
    %77 = arith.addf %76, %34 : vector<8x128xf32>
    %c1 = arith.constant 1 : index
    %c0_42 = arith.constant 0 : index
    %c0_43 = arith.constant 0 : index
    %78 = vector.load %arg10[%c1, %c0_42, %c0_43] : memref<4x128x128xf32, #tpu.memory_space<vmem>>, vector<1x128x128xf32>
    %79 = vector.shape_cast %78 : vector<1x128x128xf32> to vector<128x128xf32>
    %cst_44 = arith.constant dense<0.000000e+00> : vector<8x128xf32>
    %80 = tpu.matmul %77, %79, %cst_44 {dimension_numbers = #tpu.dot_dimension_numbers<[1], [0], [0], [1], [0, 0, 1, 1], [], []>} : vector<8x128xf32>, vector<128x128xf32>, vector<8x128xf32> -> vector<8x128xf32>
    %c1_45 = arith.constant 1 : index
    %c0_46 = arith.constant 0 : index
    %c0_47 = arith.constant 0 : index
    %81 = vector.load %arg11[%c1_45, %c0_46, %c0_47] : memref<4x1x128xf32, #tpu.memory_space<vmem>>, vector<1x1x128xf32>
    %82 = vector.shape_cast %81 : vector<1x1x128xf32> to vector<1x128xf32>
    %83 = vector.broadcast %82 : vector<1x128xf32> to vector<8x128xf32>
    %84 = arith.addf %80, %83 : vector<8x128xf32>
    %cst_48 = arith.constant dense<0.000000e+00> : vector<8xf32>
    %85 = vector.multi_reduction <add>, %84, %cst_48 [1] : vector<8x128xf32> to vector<8xf32>
    %86 = vector.shape_cast %85 : vector<8xf32> to vector<8x1xf32>
    %87 = arith.mulf %84, %84 : vector<8x128xf32>
    %cst_49 = arith.constant dense<0.000000e+00> : vector<8xf32>
    %88 = vector.multi_reduction <add>, %87, %cst_49 [1] : vector<8x128xf32> to vector<8xf32>
    %89 = vector.shape_cast %88 : vector<8xf32> to vector<8x1xf32>
    %cst_50 = arith.constant 7.812500e-03 : f32
    %90 = vector.broadcast %cst_50 : f32 to vector<8x1xf32>
    %91 = arith.mulf %86, %90 : vector<8x1xf32>
    %cst_51 = arith.constant 7.812500e-03 : f32
    %92 = vector.broadcast %cst_51 : f32 to vector<8x1xf32>
    %93 = arith.mulf %89, %92 : vector<8x1xf32>
    %94 = arith.mulf %91, %91 : vector<8x1xf32>
    %95 = arith.subf %93, %94 : vector<8x1xf32>
    %96 = vector.broadcast %91 : vector<8x1xf32> to vector<8x128xf32>
    %97 = arith.subf %84, %96 : vector<8x128xf32>
    %cst_52 = arith.constant 9.99999974E-6 : f32
    %98 = vector.broadcast %cst_52 : f32 to vector<8x1xf32>
    %99 = arith.addf %95, %98 : vector<8x1xf32>
    %100 = math.rsqrt %99 : vector<8x1xf32>
    %101 = vector.broadcast %100 : vector<8x1xf32> to vector<8x128xf32>
    %102 = arith.mulf %97, %101 : vector<8x128xf32>
    %c1_53 = arith.constant 1 : index
    %c0_54 = arith.constant 0 : index
    %c0_55 = arith.constant 0 : index
    %103 = vector.load %arg12[%c1_53, %c0_54, %c0_55] : memref<4x1x128xf32, #tpu.memory_space<vmem>>, vector<1x1x128xf32>
    %104 = vector.shape_cast %103 : vector<1x1x128xf32> to vector<1x128xf32>
    %105 = vector.broadcast %104 : vector<1x128xf32> to vector<8x128xf32>
    %106 = arith.mulf %102, %105 : vector<8x128xf32>
    %c1_56 = arith.constant 1 : index
    %c0_57 = arith.constant 0 : index
    %c0_58 = arith.constant 0 : index
    %107 = vector.load %arg13[%c1_56, %c0_57, %c0_58] : memref<4x1x128xf32, #tpu.memory_space<vmem>>, vector<1x1x128xf32>
    %108 = vector.shape_cast %107 : vector<1x1x128xf32> to vector<1x128xf32>
    %109 = vector.broadcast %108 : vector<1x128xf32> to vector<8x128xf32>
    %110 = arith.addf %106, %109 : vector<8x128xf32>
    %cst_59 = arith.constant 2.000000e+01 : f32
    %111 = vector.broadcast %cst_59 : f32 to vector<8x128xf32>
    %112 = arith.cmpf ogt, %110, %111 : vector<8x128xf32>
    %cst_60 = arith.constant 2.000000e+01 : f32
    %113 = vector.broadcast %cst_60 : f32 to vector<8x128xf32>
    %114 = arith.minimumf %110, %113 : vector<8x128xf32>
    %115 = math.exp %114 : vector<8x128xf32>
    %116 = math.log1p %115 : vector<8x128xf32>
    %117 = arith.select %112, %110, %116 : vector<8x128xi1>, vector<8x128xf32>
    %118 = math.tanh %117 : vector<8x128xf32>
    %119 = arith.mulf %110, %118 : vector<8x128xf32>
    %120 = arith.addf %119, %34 : vector<8x128xf32>
    %c2 = arith.constant 2 : index
    %c0_61 = arith.constant 0 : index
    %c0_62 = arith.constant 0 : index
    %121 = vector.load %arg10[%c2, %c0_61, %c0_62] : memref<4x128x128xf32, #tpu.memory_space<vmem>>, vector<1x128x128xf32>
    %122 = vector.shape_cast %121 : vector<1x128x128xf32> to vector<128x128xf32>
    %cst_63 = arith.constant dense<0.000000e+00> : vector<8x128xf32>
    %123 = tpu.matmul %120, %122, %cst_63 {dimension_numbers = #tpu.dot_dimension_numbers<[1], [0], [0], [1], [0, 0, 1, 1], [], []>} : vector<8x128xf32>, vector<128x128xf32>, vector<8x128xf32> -> vector<8x128xf32>
    %c2_64 = arith.constant 2 : index
    %c0_65 = arith.constant 0 : index
    %c0_66 = arith.constant 0 : index
    %124 = vector.load %arg11[%c2_64, %c0_65, %c0_66] : memref<4x1x128xf32, #tpu.memory_space<vmem>>, vector<1x1x128xf32>
    %125 = vector.shape_cast %124 : vector<1x1x128xf32> to vector<1x128xf32>
    %126 = vector.broadcast %125 : vector<1x128xf32> to vector<8x128xf32>
    %127 = arith.addf %123, %126 : vector<8x128xf32>
    %cst_67 = arith.constant dense<0.000000e+00> : vector<8xf32>
    %128 = vector.multi_reduction <add>, %127, %cst_67 [1] : vector<8x128xf32> to vector<8xf32>
    %129 = vector.shape_cast %128 : vector<8xf32> to vector<8x1xf32>
    %130 = arith.mulf %127, %127 : vector<8x128xf32>
    %cst_68 = arith.constant dense<0.000000e+00> : vector<8xf32>
    %131 = vector.multi_reduction <add>, %130, %cst_68 [1] : vector<8x128xf32> to vector<8xf32>
    %132 = vector.shape_cast %131 : vector<8xf32> to vector<8x1xf32>
    %cst_69 = arith.constant 7.812500e-03 : f32
    %133 = vector.broadcast %cst_69 : f32 to vector<8x1xf32>
    %134 = arith.mulf %129, %133 : vector<8x1xf32>
    %cst_70 = arith.constant 7.812500e-03 : f32
    %135 = vector.broadcast %cst_70 : f32 to vector<8x1xf32>
    %136 = arith.mulf %132, %135 : vector<8x1xf32>
    %137 = arith.mulf %134, %134 : vector<8x1xf32>
    %138 = arith.subf %136, %137 : vector<8x1xf32>
    %139 = vector.broadcast %134 : vector<8x1xf32> to vector<8x128xf32>
    %140 = arith.subf %127, %139 : vector<8x128xf32>
    %cst_71 = arith.constant 9.99999974E-6 : f32
    %141 = vector.broadcast %cst_71 : f32 to vector<8x1xf32>
    %142 = arith.addf %138, %141 : vector<8x1xf32>
    %143 = math.rsqrt %142 : vector<8x1xf32>
    %144 = vector.broadcast %143 : vector<8x1xf32> to vector<8x128xf32>
    %145 = arith.mulf %140, %144 : vector<8x128xf32>
    %c2_72 = arith.constant 2 : index
    %c0_73 = arith.constant 0 : index
    %c0_74 = arith.constant 0 : index
    %146 = vector.load %arg12[%c2_72, %c0_73, %c0_74] : memref<4x1x128xf32, #tpu.memory_space<vmem>>, vector<1x1x128xf32>
    %147 = vector.shape_cast %146 : vector<1x1x128xf32> to vector<1x128xf32>
    %148 = vector.broadcast %147 : vector<1x128xf32> to vector<8x128xf32>
    %149 = arith.mulf %145, %148 : vector<8x128xf32>
    %c2_75 = arith.constant 2 : index
    %c0_76 = arith.constant 0 : index
    %c0_77 = arith.constant 0 : index
    %150 = vector.load %arg13[%c2_75, %c0_76, %c0_77] : memref<4x1x128xf32, #tpu.memory_space<vmem>>, vector<1x1x128xf32>
    %151 = vector.shape_cast %150 : vector<1x1x128xf32> to vector<1x128xf32>
    %152 = vector.broadcast %151 : vector<1x128xf32> to vector<8x128xf32>
    %153 = arith.addf %149, %152 : vector<8x128xf32>
    %cst_78 = arith.constant 2.000000e+01 : f32
    %154 = vector.broadcast %cst_78 : f32 to vector<8x128xf32>
    %155 = arith.cmpf ogt, %153, %154 : vector<8x128xf32>
    %cst_79 = arith.constant 2.000000e+01 : f32
    %156 = vector.broadcast %cst_79 : f32 to vector<8x128xf32>
    %157 = arith.minimumf %153, %156 : vector<8x128xf32>
    %158 = math.exp %157 : vector<8x128xf32>
    %159 = math.log1p %158 : vector<8x128xf32>
    %160 = arith.select %155, %153, %159 : vector<8x128xi1>, vector<8x128xf32>
    %161 = math.tanh %160 : vector<8x128xf32>
    %162 = arith.mulf %153, %161 : vector<8x128xf32>
    %163 = arith.addf %162, %34 : vector<8x128xf32>
    %c3 = arith.constant 3 : index
    %c0_80 = arith.constant 0 : index
    %c0_81 = arith.constant 0 : index
    %164 = vector.load %arg10[%c3, %c0_80, %c0_81] : memref<4x128x128xf32, #tpu.memory_space<vmem>>, vector<1x128x128xf32>
    %165 = vector.shape_cast %164 : vector<1x128x128xf32> to vector<128x128xf32>
    %cst_82 = arith.constant dense<0.000000e+00> : vector<8x128xf32>
    %166 = tpu.matmul %163, %165, %cst_82 {dimension_numbers = #tpu.dot_dimension_numbers<[1], [0], [0], [1], [0, 0, 1, 1], [], []>} : vector<8x128xf32>, vector<128x128xf32>, vector<8x128xf32> -> vector<8x128xf32>
    %c3_83 = arith.constant 3 : index
    %c0_84 = arith.constant 0 : index
    %c0_85 = arith.constant 0 : index
    %167 = vector.load %arg11[%c3_83, %c0_84, %c0_85] : memref<4x1x128xf32, #tpu.memory_space<vmem>>, vector<1x1x128xf32>
    %168 = vector.shape_cast %167 : vector<1x1x128xf32> to vector<1x128xf32>
    %169 = vector.broadcast %168 : vector<1x128xf32> to vector<8x128xf32>
    %170 = arith.addf %166, %169 : vector<8x128xf32>
    %cst_86 = arith.constant dense<0.000000e+00> : vector<8xf32>
    %171 = vector.multi_reduction <add>, %170, %cst_86 [1] : vector<8x128xf32> to vector<8xf32>
    %172 = vector.shape_cast %171 : vector<8xf32> to vector<8x1xf32>
    %173 = arith.mulf %170, %170 : vector<8x128xf32>
    %cst_87 = arith.constant dense<0.000000e+00> : vector<8xf32>
    %174 = vector.multi_reduction <add>, %173, %cst_87 [1] : vector<8x128xf32> to vector<8xf32>
    %175 = vector.shape_cast %174 : vector<8xf32> to vector<8x1xf32>
    %cst_88 = arith.constant 7.812500e-03 : f32
    %176 = vector.broadcast %cst_88 : f32 to vector<8x1xf32>
    %177 = arith.mulf %172, %176 : vector<8x1xf32>
    %cst_89 = arith.constant 7.812500e-03 : f32
    %178 = vector.broadcast %cst_89 : f32 to vector<8x1xf32>
    %179 = arith.mulf %175, %178 : vector<8x1xf32>
    %180 = arith.mulf %177, %177 : vector<8x1xf32>
    %181 = arith.subf %179, %180 : vector<8x1xf32>
    %182 = vector.broadcast %177 : vector<8x1xf32> to vector<8x128xf32>
    %183 = arith.subf %170, %182 : vector<8x128xf32>
    %cst_90 = arith.constant 9.99999974E-6 : f32
    %184 = vector.broadcast %cst_90 : f32 to vector<8x1xf32>
    %185 = arith.addf %181, %184 : vector<8x1xf32>
    %186 = math.rsqrt %185 : vector<8x1xf32>
    %187 = vector.broadcast %186 : vector<8x1xf32> to vector<8x128xf32>
    %188 = arith.mulf %183, %187 : vector<8x128xf32>
    %c3_91 = arith.constant 3 : index
    %c0_92 = arith.constant 0 : index
    %c0_93 = arith.constant 0 : index
    %189 = vector.load %arg12[%c3_91, %c0_92, %c0_93] : memref<4x1x128xf32, #tpu.memory_space<vmem>>, vector<1x1x128xf32>
    %190 = vector.shape_cast %189 : vector<1x1x128xf32> to vector<1x128xf32>
    %191 = vector.broadcast %190 : vector<1x128xf32> to vector<8x128xf32>
    %192 = arith.mulf %188, %191 : vector<8x128xf32>
    %c3_94 = arith.constant 3 : index
    %c0_95 = arith.constant 0 : index
    %c0_96 = arith.constant 0 : index
    %193 = vector.load %arg13[%c3_94, %c0_95, %c0_96] : memref<4x1x128xf32, #tpu.memory_space<vmem>>, vector<1x1x128xf32>
    %194 = vector.shape_cast %193 : vector<1x1x128xf32> to vector<1x128xf32>
    %195 = vector.broadcast %194 : vector<1x128xf32> to vector<8x128xf32>
    %196 = arith.addf %192, %195 : vector<8x128xf32>
    %cst_97 = arith.constant 2.000000e+01 : f32
    %197 = vector.broadcast %cst_97 : f32 to vector<8x128xf32>
    %198 = arith.cmpf ogt, %196, %197 : vector<8x128xf32>
    %cst_98 = arith.constant 2.000000e+01 : f32
    %199 = vector.broadcast %cst_98 : f32 to vector<8x128xf32>
    %200 = arith.minimumf %196, %199 : vector<8x128xf32>
    %201 = math.exp %200 : vector<8x128xf32>
    %202 = math.log1p %201 : vector<8x128xf32>
    %203 = arith.select %198, %196, %202 : vector<8x128xi1>, vector<8x128xf32>
    %204 = math.tanh %203 : vector<8x128xf32>
    %205 = arith.mulf %196, %204 : vector<8x128xf32>
    %206 = arith.addf %205, %34 : vector<8x128xf32>
    %c0_99 = arith.constant 0 : index
    %c0_100 = arith.constant 0 : index
    %207 = vector.load %arg14[%c0_99, %c0_100] : memref<128x128xf32, #tpu.memory_space<vmem>>, vector<128x128xf32>
    %cst_101 = arith.constant dense<0.000000e+00> : vector<8x128xf32>
    %208 = tpu.matmul %206, %207, %cst_101 {dimension_numbers = #tpu.dot_dimension_numbers<[1], [0], [0], [1], [0, 0, 1, 1], [], []>} : vector<8x128xf32>, vector<128x128xf32>, vector<8x128xf32> -> vector<8x128xf32>
    %c0_102 = arith.constant 0 : index
    %c0_103 = arith.constant 0 : index
    %209 = vector.load %arg15[%c0_102, %c0_103] : memref<1x128xf32, #tpu.memory_space<vmem>>, vector<1x128xf32>
    %210 = vector.broadcast %209 : vector<1x128xf32> to vector<8x128xf32>
    %211 = arith.addf %208, %210 : vector<8x128xf32>
    %c0_104 = arith.constant 0 : index
    %c0_105 = arith.constant 0 : index
    %212 = vector.load %arg16[%c0_104, %c0_105] : memref<8x128xf32, #tpu.memory_space<vmem>>, vector<8x128xf32>
    tpu.vector_store %arg16[%c0_104, %c0_105], %211 {strides = array<i32>} : memref<8x128xf32, #tpu.memory_space<vmem>>, vector<8x128xf32>,
    return
  }
  func.func @transform_0(%arg0: i32) -> (i32, i32) {
    %c0_i32 = arith.constant 0 : i32
    %c0_i32_0 = arith.constant 0 : i32
    return %arg0, %c0_i32 : i32, i32
  }
  func.func @transform_1(%arg0: i32) -> (i32, i32) {
    %c0_i32 = arith.constant 0 : i32
    %c0_i32_0 = arith.constant 0 : i32
    return %arg0, %c0_i32 : i32, i32
  }
  func.func @transform_2(%arg0: i32) -> (i32, i32) {
    %c0_i32 = arith.constant 0 : i32
    %c0_i32_0 = arith.constant 0 : i32
    %c0_i32_1 = arith.constant 0 : i32
    return %c0_i32, %c0_i32_0 : i32, i32
  }
  func.func @transform_3(%arg0: i32) -> (i32, i32) {
    %c0_i32 = arith.constant 0 : i32
    %c0_i32_0 = arith.constant 0 : i32
    %c0_i32_1 = arith.constant 0 : i32
    return %c0_i32, %c0_i32_0 : i32, i32
  }
  func.func @transform_4(%arg0: i32) -> (i32, i32) {
    %c0_i32 = arith.constant 0 : i32
    %c0_i32_0 = arith.constant 0 : i32
    %c0_i32_1 = arith.constant 0 : i32
    return %c0_i32, %c0_i32_0 : i32, i32
  }
  func.func @transform_5(%arg0: i32) -> (i32, i32) {
    %c0_i32 = arith.constant 0 : i32
    %c0_i32_0 = arith.constant 0 : i32
    %c0_i32_1 = arith.constant 0 : i32
    return %c0_i32, %c0_i32_0 : i32, i32
  }
  func.func @transform_6(%arg0: i32) -> (i32, i32) {
    %c0_i32 = arith.constant 0 : i32
    %c0_i32_0 = arith.constant 0 : i32
    %c0_i32_1 = arith.constant 0 : i32
    return %c0_i32, %c0_i32_0 : i32, i32
  }
  func.func @transform_7(%arg0: i32) -> (i32, i32) {
    %c0_i32 = arith.constant 0 : i32
    %c0_i32_0 = arith.constant 0 : i32
    %c0_i32_1 = arith.constant 0 : i32
    return %c0_i32, %c0_i32_0 : i32, i32
  }
  func.func @transform_8(%arg0: i32) -> (i32, i32) {
    %c0_i32 = arith.constant 0 : i32
    %c0_i32_0 = arith.constant 0 : i32
    %c0_i32_1 = arith.constant 0 : i32
    return %c0_i32, %c0_i32_0 : i32, i32
  }
  func.func @transform_9(%arg0: i32) -> (i32, i32, i32) {
    %c0_i32 = arith.constant 0 : i32
    %c0_i32_0 = arith.constant 0 : i32
    %c0_i32_1 = arith.constant 0 : i32
    %c0_i32_2 = arith.constant 0 : i32
    return %c0_i32, %c0_i32_0, %c0_i32_1 : i32, i32, i32
  }
  func.func @transform_10(%arg0: i32) -> (i32, i32, i32) {
    %c0_i32 = arith.constant 0 : i32
    %c0_i32_0 = arith.constant 0 : i32
    %c0_i32_1 = arith.constant 0 : i32
    %c0_i32_2 = arith.constant 0 : i32
    return %c0_i32, %c0_i32_0, %c0_i32_1 : i32, i32, i32
  }
  func.func @transform_11(%arg0: i32) -> (i32, i32, i32) {
    %c0_i32 = arith.constant 0 : i32
    %c0_i32_0 = arith.constant 0 : i32
    %c0_i32_1 = arith.constant 0 : i32
    %c0_i32_2 = arith.constant 0 : i32
    return %c0_i32, %c0_i32_0, %c0_i32_1 : i32, i32, i32
  }
  func.func @transform_12(%arg0: i32) -> (i32, i32, i32) {
    %c0_i32 = arith.constant 0 : i32
    %c0_i32_0 = arith.constant 0 : i32
    %c0_i32_1 = arith.constant 0 : i32
    %c0_i32_2 = arith.constant 0 : i32
    return %c0_i32, %c0_i32_0, %c0_i32_1 : i32, i32, i32
  }
  func.func @transform_13(%arg0: i32) -> (i32, i32) {
    %c0_i32 = arith.constant 0 : i32
    %c0_i32_0 = arith.constant 0 : i32
    %c0_i32_1 = arith.constant 0 : i32
    return %c0_i32, %c0_i32_0 : i32, i32
  }
  func.func @transform_14(%arg0: i32) -> (i32, i32) {
    %c0_i32 = arith.constant 0 : i32
    %c0_i32_0 = arith.constant 0 : i32
    %c0_i32_1 = arith.constant 0 : i32
    return %c0_i32, %c0_i32_0 : i32, i32
  }
  func.func @transform_15(%arg0: i32) -> (i32, i32) {
    %c0_i32 = arith.constant 0 : i32
    %c0_i32_0 = arith.constant 0 : i32
    return %arg0, %c0_i32 : i32, i32
  }
}

</mosaic_0001>

<bundles_post_ra>
// kernel: tpu_custom_call.1
= control target key start
LH: loop header
LB: loop body
LE: loop exit
PB: predicated region body
PF: predicated region fallthrough
CT: control target
= control target key end

     0   :  { %20 = vsyncpa [#allocation3], 0  ;;  %s1346_s0 = inlined_call_operand.vmem [shape: f32[8,1], index: 0, kind: input, shape index: {}]   ;;  %s1347_s1 = inlined_call_operand.vmem [shape: f32[8,40], index: 1, kind: input, shape index: {}]   ;;  %s1348_s2 = inlined_call_operand.hbm [shape: f32[1,64], index: 2, kind: input, shape index: {}]   ;;  %s1349_s3 = inlined_call_operand.hbm [shape: f32[1,64], index: 3, kind: input, shape index: {}]   ;;  %s1350_s4 = inlined_call_operand.hbm [shape: f32[64,64], index: 4, kind: input, shape index: {}]   ;;  %s1351_s5 = inlined_call_operand.hbm [shape: f32[1,64], index: 5, kind: input, shape index: {}]   ;;  %s1352_s6 = inlined_call_operand.hbm [shape: f32[40,256], index: 6, kind: input, shape index: {}]   ;;  %s1353_s7 = inlined_call_operand.hbm [shape: f32[64,256], index: 7, kind: input, shape index: {}]   ;;  %s1354_s8 = inlined_call_operand.hbm [shape: f32[1,256], index: 8, kind: input, shape index: {}]   ;;  %s1355_s9 = inlined_call_operand.hbm [shape: f32[4,128,128], index: 9, kind: input, shape index: {}]   ;;  %s1356_s10 = inlined_call_operand.vmem [shape: f32[4,1,128], index: 10, kind: input, shape index: {}]   ;;  %s1357_s11 = inlined_call_operand.vmem [shape: f32[4,1,128], index: 11, kind: input, shape index: {}]   ;;  %s1358_s12 = inlined_call_operand.vmem [shape: f32[4,1,128], index: 12, kind: input, shape index: {}]   ;;  %s1359_s13 = inlined_call_operand.hbm [shape: f32[128,128], index: 13, kind: input, shape index: {}]   ;;  %s1360_s14 = inlined_call_operand.vmem [shape: f32[1,128], index: 14, kind: input, shape index: {}]   ;;  %s1361_s15 = inlined_call_operand.hbm [shape: f32[8,128], index: 15, kind: output, shape index: {}]  }
   0x1   :  { %21 = vsyncpa [#allocation6], 0 }
   0x2   :  { %22 = vsyncpa [#allocation9], 0 }
   0x3   :  { %23 = vsyncpa [#allocation12], 0 }
   0x4   :  { %24 = vsyncpa [#allocation15], 0  ;;  %s46_s20 = sshll.u32 %s1349_s3, 4  ;;  %s47_s20 = int_to_ptr.hbm [resolvable:$true] %s46_s20 }
   0x5   :  { %25 = vsyncpa [#allocation4], 0  ;;  %s1140_s21 = smov [#allocation5]   ;;  %s70_s25 = sshll.u32 %s1351_s5, 4  ;;  %s71_s25 = int_to_ptr.hbm [resolvable:$true] %s70_s25 }
   0x6   :  { %s48_s22 = sshll.u32 %s1140_s21, 4  ;;  %s1141_s26 = smov [#allocation8]   ;;  %s49_s22 = int_to_ptr.vmem [resolvable:$true] %s48_s22 }
   0x7   :  { %51 = dma.hbm_to_vmem [thread:$0]  %s47_s20, 16, %s49_s22, [#allocation6]  }
   0x8   :  { %s72_s27 = sshll.u32 %s1141_s26, 4  ;;  %s93_s30 = sshll.u32 %s1353_s7, 4  ;;  %s73_s27 = int_to_ptr.vmem [resolvable:$true] %s72_s27  ;;  %s94_s30 = int_to_ptr.hbm [resolvable:$true] %s93_s30 }
   0x9   :  { %75 = dma.hbm_to_vmem [thread:$0]  %s71_s25, 16, %s73_s27, [#allocation9]  }
   0xa   :  { %s1142_s3 = smov [#allocation11]   ;;  %s1143_s17 = smov 256  }
   0xb   :  { %s95_s16 = sshll.u32 %s1142_s3, 4  ;;  %s1144_s18 = smov 16   ;;  %s96_s16 = int_to_ptr.vmem [resolvable:$true] %s95_s16 }
   0xc   :  { %101 = dma.hbm_to_vmem [thread:$0]  %s94_s30, 2048, %s96_s16, [#allocation12], %s1143_s17, %s1143_s17, %s1144_s18  }
   0xd   :  { %s117_s20 = sshll.u32 %s1355_s9, 4  ;;  %s1145_s21 = smov [#allocation14]   ;;  %s118_s20 = int_to_ptr.hbm [resolvable:$true] %s117_s20 }
   0xe   :  { %s119_s22 = sshll.u32 %s1145_s21, 4  ;;  %s35_s7 = sshll.u32 %s1348_s2, 4  ;;  %s120_s22 = int_to_ptr.vmem [resolvable:$true] %s119_s22  ;;  %s36_s7 = int_to_ptr.hbm [resolvable:$true] %s35_s7 }
   0xf   :  { %s1146_s25 = smov 128   ;;  %s1147_s26 = smov 8  }
  0x10   :  { %125 = dma.hbm_to_vmem [thread:$0]  %s118_s20, 8192, %s120_s22, [#allocation15], %s1146_s25, %s1146_s25, %s1147_s26  }
  0x11   :  { %s56_s29 = sshll.u32 %s1350_s4, 4  ;;  %s1148_s9 = smov [#allocation2]   ;;  %s57_s29 = int_to_ptr.hbm [resolvable:$true] %s56_s29 }
  0x12   :  { %s37_s30 = sshll.u32 %s1148_s9, 4  ;;  %s1149_s3 = smov [#allocation7]   ;;  %s38_s30 = int_to_ptr.vmem [resolvable:$true] %s37_s30 }
  0x13   :  { %40 = dma.hbm_to_vmem [thread:$0]  %s36_s7, 16, %s38_s30, [#allocation3]  }
  0x14   :  { %s58_s16 = sshll.u32 %s1149_s3, 4  ;;  %s80_s19 = sshll.u32 %s1352_s6, 4  ;;  %s59_s16 = int_to_ptr.vmem [resolvable:$true] %s58_s16  ;;  %s81_s19 = int_to_ptr.hbm [resolvable:$true] %s80_s19 }
  0x15   :  { %64 = dma.hbm_to_vmem [thread:$0]  %s57_s29, 1024, %s59_s16, [#allocation6], %s1146_s25, %s1146_s25, %s1147_s26  }
  0x16   :  { %s107_s4 = sshll.u32 %s1354_s8, 4  ;;  %s1150_s22 = smov [#allocation10]   ;;  %s108_s4 = int_to_ptr.hbm [resolvable:$true] %s107_s4 }
  0x17   :  { %s82_s23 = sshll.u32 %s1150_s22, 4  ;;  %s1151_s24 = smov [#allocation13]   ;;  %s83_s23 = int_to_ptr.vmem [resolvable:$true] %s82_s23 }
  0x18   :  { %88 = dma.hbm_to_vmem [thread:$0]  %s81_s19, 1280, %s83_s23, [#allocation9], %s1143_s17, %s1143_s17, %s1144_s18  }
  0x19   :  { %s109_s6 = sshll.u32 %s1151_s24, 4  ;;  %s136_s28 = sshll.u32 %s1359_s13, 4  ;;  %s110_s6 = int_to_ptr.vmem [resolvable:$true] %s109_s6  ;;  %s137_s28 = int_to_ptr.hbm [resolvable:$true] %s136_s28 }
  0x1a   :  { %112 = dma.hbm_to_vmem [thread:$0]  %s108_s4, 32, %s110_s6, [#allocation12]  }
  0x1b   :  { %s1152_s29 = smov [#allocation16]  }
  0x1c   :  { %s138_s9 = sshll.u32 %s1152_s29, 4  ;;  %s139_s9 = int_to_ptr.vmem [resolvable:$true] %s138_s9 }
  0x1d   :  { %144 = dma.hbm_to_vmem [thread:$0]  %s137_s28, 2048, %s139_s9, [#allocation15], %s1146_s25, %s1146_s25, %s1147_s26  }
  0x1e   :  { %1128 = dma.done.wait [#allocation3], 16  }
  0x1f   :  { %1129 = vsyncadd [#allocation3], 4294967280 }
  0x20   :  { %1130 = dma.done.wait [#allocation6], 1040  }
  0x21   :  { %1131 = vsyncadd [#allocation6], 4294966256 }
  0x22   :  { %1132 = dma.done.wait [#allocation9], 1296  }
  0x23   :  { %1133 = vsyncadd [#allocation9], 4294966000 }
  0x24   :  { %1134 = dma.done.wait [#allocation12], 2080  }
  0x25   :  { %1135 = vsyncadd [#allocation12], 4294965216 }
  0x26   :  { %1136 = dma.done.wait [#allocation15], 10240  }
  0x27   :  { %1137 = vsyncadd [#allocation15], 4294957056  ;;  %v1153_v0 = vmov 0   ;;  %v183_v1 = vld [vmem:[%s1346_s0] sm:$0xff]  ;;  %v222_v4 = vld [vmem:[#allocation7 + $0x30] sm:$0xff]  ;;  %vm322_vm0 = vcmask 326656  }
  0x28   :  { %833 = vset.pattern.permute.xlu0 %v1153_v0  ;;  %v184_v2 = vmul.f32 0.01, %v183_v1  ;;  %v223_v3 = vld [vmem:[#allocation7 + $0x38] sm:$0xff]  ;;  %v221_v5 = vld [vmem:[#allocation7 + $0x28] sm:$0xff]  ;;  %v220_v6 = vld [vmem:[#allocation7 + $0x20] sm:$0xff]  ;;  %vm228_vm3 = vcmask 523264  }
  0x29   :  { %240 = vmatpush.msra.mxu1 %v223_v3  ;;  %v834_v7 = vld [vmem:[#allocation2] ss:$0 sm:$0xff]  ;;  %v218_v9 = vld [vmem:[#allocation7 + $0x10] sm:$0xff]  ;;  %v835_v10 = vld [vmem:[#allocation5] ss:$0 sm:$0xff]  ;;  %s1154_s13 = smov [#allocation17]  }
  0x2a   :  { %188 = vperm.xlu0 %833, %v184_v2   ;;  %v219_v8 = vld [vmem:[#allocation7 + $0x18] sm:$0xff]  ;;  %v217_v12 = vld [vmem:[#allocation7 + $0x8] sm:$0xff]  ;;  %v216_v14 = vld [vmem:[#allocation7] sm:$0xff]  ;;  %s788_s0 = sshll.u32 %s1154_s13, 4  ;;  %s790_s18 = sshll.u32 %s1361_s15, 4  ;;  %s789_s0 = int_to_ptr.vmem [resolvable:$true] %s788_s0  ;;  %s791_s18 = int_to_ptr.hbm [resolvable:$true] %s790_s18 }
  0x2b   :  { %241 = vmatpush.msra.mxu1 %v222_v4  ;;  %v261_v17 = vld [vmem:[#allocation10 + $0x40] sm:$0xff]  ;;  %v259_v18 = vld [vmem:[#allocation10 + $0x30] sm:$0xff]  ;;  %v278_v21 = vld [vmem:[#allocation11 + $0x78] sm:$0xff] }
  0x2c   :  { %v277_v19 = vld [vmem:[#allocation11 + $0x70] sm:$0xff]  ;;  %337 = vmatpush.msra.mxu3 %v261_v17  ;;  %v275_v22 = vld [vmem:[#allocation11 + $0x60] sm:$0xff]  ;;  %310 = vmatpush.msra.mxu2 %v278_v21  ;;  %v276_v24 = vld [vmem:[#allocation11 + $0x68] sm:$0xff] }
  0x2d   :  { %242 = vmatpush.msra.mxu1 %v221_v5  ;;  %v257_v23 = vld [vmem:[#allocation10 + $0x20] sm:$0xff]  ;;  %v274_v26 = vld [vmem:[#allocation11 + $0x58] sm:$0xff]  ;;  %v255_v27 = vld [vmem:[#allocation10 + $0x10] sm:$0xff] }
  0x2e   :  { %v273_v25 = vld [vmem:[#allocation11 + $0x50] sm:$0xff]  ;;  %338 = vmatpush.msra.mxu3 %v259_v18  ;;  %311 = vmatpush.msra.mxu2 %v276_v24  ;;  %v271_v28 = vld [vmem:[#allocation11 + $0x40] sm:$0xff]  ;;  %v272_v29 = vld [vmem:[#allocation11 + $0x48] sm:$0xff] }
  0x2f   :  { %243 = vmatpush.msra.mxu1 %v220_v6  ;;  %v253_v30 = vld [vmem:[#allocation10] sm:$0xff]  ;;  %v262_v32 = vld [vmem:[#allocation10 + $0x48] sm:$0xff]  ;;  %v267_v35 = vld [vmem:[#allocation11 + $0x20] sm:$0xff] }
  0x30   :  { %339 = vmatpush.msra.mxu3 %v257_v23  ;;  %312 = vmatpush.msra.mxu2 %v274_v26  ;;  %v269_v31 = vld [vmem:[#allocation11 + $0x30] sm:$0xff]  ;;  %v270_v33 = vld [vmem:[#allocation11 + $0x38] sm:$0xff]  ;;  %v260_v37 = vld [vmem:[#allocation10 + $0x38] sm:$0xff] }
  0x31   :  { %244 = vmatpush.msra.mxu1 %v219_v8  ;;  %v252_v34 = vld [vmem:[%s1347_s1] sm:$0xff]  ;;  %v258_v41 = vld [vmem:[#allocation10 + $0x28] sm:$0xff]  ;;  %v263_v54 = vld [vmem:[#allocation11] sm:$0xff] }
  0x32   :  { %340 = vmatpush.msra.mxu3 %v255_v27  ;;  %313 = vmatpush.msra.mxu2 %v272_v29  ;;  %v268_v38 = vld [vmem:[#allocation11 + $0x28] sm:$0xff]  ;;  %v265_v51 = vld [vmem:[#allocation11 + $0x10] sm:$0xff]  ;;  %v266_v52 = vld [vmem:[#allocation11 + $0x18] sm:$0xff] }
  0x33   :  { %245 = vmatpush.msra.mxu1 %v218_v9  ;;  %v256_v53 = vld [vmem:[#allocation10 + $0x18] sm:$0xff]  ;;  %v254_v56 = vld [vmem:[#allocation10 + $0x8] sm:$0xff] }
  0x34   :  { %341 = vmatpush.msra.mxu3 %v253_v30  ;;  %314 = vmatpush.msra.mxu2 %v270_v33  ;;  %v264_v55 = vld [vmem:[#allocation11 + $0x8] sm:$0xff]  ;;  %v389_v57 = vld [vmem:[#allocation14 + $0x78] sm:$0xff]  ;;  %v388_v58 = vld [vmem:[#allocation14 + $0x70] sm:$0xff] }
  0x35   :  { %246 = vmatpush.msra.mxu1 %v217_v12  ;;  %807 = vmatmul.msk.f32.vlgmr.msra.gmra.mxu3 %vm322_vm0, %v252_v34  ;;  %v387_v59 = vld [vmem:[#allocation14 + $0x68] sm:$0xff]  ;;  %v386_v60 = vld [vmem:[#allocation14 + $0x60] sm:$0xff]  ;;  %v385_v61 = vld [vmem:[#allocation14 + $0x58] sm:$0xff] }
  0x36   :  { %357 = vmatpush.msrb.mxu3 %v262_v32  ;;  %315 = vmatpush.msra.mxu2 %v268_v38  ;;  %v384_v62 = vld [vmem:[#allocation14 + $0x50] sm:$0xff]  ;;  %v383_v63 = vld [vmem:[#allocation14 + $0x48] sm:$0xff]  ;;  %v382_v0 = vld [vmem:[#allocation14 + $0x40] sm:$0xff] }
  0x37   :  { %247 = vmatpush.msra.mxu1 %v216_v14  ;;  %394 = vmatpush.msra.mxu0 %v389_v57  ;;  %v381_v1 = vld [vmem:[#allocation14 + $0x38] sm:$0xff]  ;;  %v380_v2 = vld [vmem:[#allocation14 + $0x30] sm:$0xff]  ;;  %v379_v3 = vld [vmem:[#allocation14 + $0x28] sm:$0xff] }
  0x38   :  { %358 = vmatpush.msrb.mxu3 %v260_v37  ;;  %316 = vmatpush.msra.mxu2 %v266_v52  ;;  %v378_v4 = vld [vmem:[#allocation14 + $0x20] sm:$0xff]  ;;  %v377_v5 = vld [vmem:[#allocation14 + $0x18] sm:$0xff]  ;;  %v836_v6 = vld [vmem:[#allocation8] ss:$0 sm:$0xff] }
  0x39   :  { %290 = vmatpush.msrb.mxu1 %v277_v19  ;;  %395 = vmatpush.msra.mxu0 %v388_v58  ;;  %v376_v9 = vld [vmem:[#allocation14 + $0x10] sm:$0xff]  ;;  %v1294_v12 = vld [vmem:[#allocation13] sm:$0x3]  ;;  %v837_v18 = vld [vmem:[%s1356_s10] ss:$0 sm:$0xff] }
  0x3a   :  { %359 = vmatpush.msrb.mxu3 %v258_v41  ;;  %317 = vmatpush.msra.mxu2 %v264_v55  ;;  %v479_v27 = vld [vmem:[#allocation14 + $0xf8] sm:$0xff]  ;;  %v478_v29 = vld [vmem:[#allocation14 + $0xf0] sm:$0xff]  ;;  %v477_v30 = vld [vmem:[#allocation14 + $0xe8] sm:$0xff] }
  0x3b   :  { %291 = vmatpush.msrb.mxu1 %v275_v22  ;;  %396 = vmatpush.msra.mxu0 %v387_v59  ;;  %v476_v32 = vld [vmem:[#allocation14 + $0xe0] sm:$0xff]  ;;  %v475_v33 = vld [vmem:[#allocation14 + $0xd8] sm:$0xff]  ;;  %v465_v55 = vld [vmem:[#allocation14 + $0x88] sm:$0xff] }
  0x3c   :  { %360 = vmatpush.msrb.mxu3 %v256_v53  ;;  %v472_v38 = vld [vmem:[#allocation14 + $0xc0] sm:$0xff]  ;;  %v466_v53 = vld [vmem:[#allocation14 + $0x90] sm:$0xff] }
  0x3d   :  { %292 = vmatpush.msrb.mxu1 %v273_v25  ;;  %397 = vmatpush.msra.mxu0 %v386_v60  ;;  %v464_v57 = vld [vmem:[#allocation14 + $0x80] sm:$0xff] }
  0x3e   :  { %361 = vmatpush.msrb.mxu3 %v254_v56 }
  0x3f   :  { %293 = vmatpush.msrb.mxu1 %v271_v28  ;;  %808 = vmatmul.msk.f32.vlgmr.msrb.gmra.mxu3 %vm322_vm0, %v252_v34  ;;  %v474_v34 = vld [vmem:[#allocation14 + $0xd0] sm:$0xff] }
  0x40   :  { %398 = vmatpush.msra.mxu0 %v385_v61 }
  0x41   :  { %294 = vmatpush.msrb.mxu1 %v269_v31 }
  0x42   :  { %399 = vmatpush.msra.mxu0 %v384_v62 }
  0x43   :  { %295 = vmatpush.msrb.mxu1 %v267_v35  ;;  %v473_v35 = vld [vmem:[#allocation14 + $0xc8] sm:$0xff] }
  0x44   :  { %400 = vmatpush.msra.mxu0 %v383_v63 }
  0x45   :  { %296 = vmatpush.msrb.mxu1 %v265_v51  ;;  %v839_v51 = vld [vmem:[%s1358_s12] ss:$0 sm:$0xff] }
  0x46   :  { %401 = vmatpush.msra.mxu0 %v382_v0 }
  0x47   :  { %297 = vmatpush.msrb.mxu1 %v263_v54 }
  0x48   :  { %402 = vmatpush.msra.mxu0 %v381_v1 }
  0x4a   :  { %403 = vmatpush.msra.mxu0 %v380_v2 }
  0x4c   :  { %404 = vmatpush.msra.mxu0 %v379_v3 }
  0x4e   :  { %405 = vmatpush.msra.mxu0 %v378_v4 }
  0x50   :  { %406 = vmatpush.msra.mxu0 %v377_v5 }
  0x52   :  { %407 = vmatpush.msra.mxu0 %v376_v9  ;;  %v369_v9 = vperm.slane %v1294_v12, 1 }
  0x9c   :  { %v189_v11 = vpop.permute.xlu0 %188 }
  0x9d   :  { %v194_v13 = vmul.f32 %v834_v7, %v189_v11  ;;  %v374_v11 = vld [vmem:[#allocation14] sm:$0xff] }
  0x9f   :  { %v1280_v15 = vadd.f32 %v835_v10, %v194_v13  ;;  %v375_v10 = vld [vmem:[#allocation14 + $0x8] sm:$0xff]  ;;  %v368_v13 = vperm.slane %v1294_v12, 0 }
  0xa0   :  { %408 = vmatpush.msra.mxu0 %v375_v10  ;;  %v570_v12 = vld [vmem:[#allocation14 + $0x168] sm:$0xff] }
  0xa1   :  { %v201_v16 = vmin.f32 %v1280_v15, 20.0  ;;  %vm200_vm2 = vcmp.gt.f32.partialorder %v1280_v15, 20.0 }
  0xa2   :  { %409 = vmatpush.msra.mxu0 %v374_v11 }
  0xa3   :  { %v202_v20 = vmul.f32 1.442695, %v201_v16 }
  0xa5   :  { %850 = vpow2.f32 %v202_v20 }
  0xab   :  { %v851_v36 = vpop.eup %850 }
  0xac   :  { %v204_v39 = vadd.f32 1.0, %v851_v36  ;;  %v207_v40 = vmul.f32 -0.5, %v851_v36  ;;  %v210_v43 = vand.u32 2147483647, %v851_v36 }
  0xae   :  { %852 = vlog2.f32 %v204_v39  ;;  %v208_v42 = vadd.f32 1.0, %v207_v40  ;;  %vm211_vm1 = vcmp.lt.f32.partialorder %v210_v43, 0.0004427343  ;;  %v471_v40 = vld [vmem:[#allocation14 + $0xb8] sm:$0xff] }
  0xb0   :  { %v209_v46 = vmul.f32 %v851_v36, %v208_v42  ;;  %v470_v42 = vld [vmem:[#allocation14 + $0xb0] sm:$0xff] }
  0xb4   :  { %v853_v44 = vpop.eup %852 }
  0xb5   :  { %v206_v45 = vmul.f32 0.6931472, %v853_v44  ;;  %v469_v44 = vld [vmem:[#allocation14 + $0xa8] sm:$0xff] }
  0xb7   :  { %v212_v47 = vsel %vm211_vm1, %v209_v46, %v206_v45  ;;  %v468_v46 = vld [vmem:[#allocation14 + $0xa0] sm:$0xff] }
  0xb8   :  { %v213_v48 = vsel %vm200_vm2, %v1280_v15, %v212_v47  ;;  %v343_v14 = vpop.f32.mrf.mxu3 }
  0xb9   :  { %854 = vtanh.f32 %v213_v48  ;;  %v838_v48 = vld [vmem:[%s1357_s11] ss:$0 sm:$0xff] }
  0xbf   :  { %v855_v49 = vpop.eup %854 }
  0xc0   :  { %v215_v50 = vmul.f32 %v855_v49, %v1280_v15 }
  0xc2   :  { %804 = vmatmul.msk.f32.vlgmr.msra.gmra.mxu1 %vm228_vm3, %v215_v50  ;;  %v467_v50 = vld [vmem:[#allocation14 + $0x98] sm:$0xff] }
  0xc3   :  { %485 = vmatpush.msra.mxu1 %v479_v27  ;;  %v568_v27 = vld [vmem:[#allocation14 + $0x158] sm:$0xff] }
  0xc5   :  { %486 = vmatpush.msra.mxu1 %v478_v29  ;;  %v567_v29 = vld [vmem:[#allocation14 + $0x150] sm:$0xff] }
  0xc7   :  { %487 = vmatpush.msra.mxu1 %v477_v30 }
  0xc9   :  { %488 = vmatpush.msra.mxu1 %v476_v32  ;;  %v565_v32 = vld [vmem:[#allocation14 + $0x140] sm:$0xff] }
  0xcb   :  { %489 = vmatpush.msra.mxu1 %v475_v33  ;;  %v564_v33 = vld [vmem:[#allocation14 + $0x138] sm:$0xff] }
  0xcd   :  { %490 = vmatpush.msra.mxu1 %v474_v34  ;;  %v563_v34 = vld [vmem:[#allocation14 + $0x130] sm:$0xff] }
  0xcf   :  { %491 = vmatpush.msra.mxu1 %v473_v35 }
  0xd1   :  { %492 = vmatpush.msra.mxu1 %v472_v38  ;;  %v561_v38 = vld [vmem:[#allocation14 + $0x120] sm:$0xff] }
  0xd3   :  { %493 = vmatpush.msra.mxu1 %v471_v40  ;;  %v560_v40 = vld [vmem:[#allocation14 + $0x118] sm:$0xff] }
  0xd5   :  { %494 = vmatpush.msra.mxu1 %v470_v42  ;;  %v559_v42 = vld [vmem:[#allocation14 + $0x110] sm:$0xff] }
  0xd7   :  { %495 = vmatpush.msra.mxu1 %v469_v44  ;;  %v558_v44 = vld [vmem:[#allocation14 + $0x108] sm:$0xff] }
  0xd9   :  { %496 = vmatpush.msra.mxu1 %v468_v46 }
  0xdb   :  { %497 = vmatpush.msra.mxu1 %v467_v50 }
  0xdd   :  { %498 = vmatpush.msra.mxu1 %v466_v53 }
  0xdf   :  { %499 = vmatpush.msra.mxu1 %v465_v55 }
  0xe1   :  { %500 = vmatpush.msra.mxu1 %v464_v57 }
 0x13f   :  { %v249_v7 = vpop.f32.mrf.mxu1 }
 0x140   :  { %v250_v8 = vadd.f32 %v836_v6, %v249_v7  ;;  %v363_v7 = vpop.f32.mrf.mxu3 }
 0x142   :  { %805 = vmatmul.msk.f32.vlgmr.msrb.gmra.mxu1 %vm228_vm3, %v250_v8  ;;  %806 = vmatmul.msk.f32.vlgmr.msra.gmra.mxu2 %vm228_vm3, %v250_v8 }
 0x1bf   :  { %v299_v15 = vpop.f32.mrf.mxu1 }
 0x1c0   :  { %v344_v16 = vadd.f32 %v343_v14, %v299_v15  ;;  %v840_v15 = vld [vmem:[%s1356_s10 + $0x1] ss:$0 sm:$0xff] }
 0x1c2   :  { %v372_v17 = vadd.f32 %v368_v13, %v344_v16 }
 0x1c4   :  { %410 = vmatmul.f32.vlgmr.msra.gmra.mxu0 %v372_v17 }
 0x1c5   :  { %v319_v6 = vpop.f32.mrf.mxu2 }
 0x1c6   :  { %v364_v8 = vadd.f32 %v363_v7, %v319_v6 }
 0x1c8   :  { %v1307_v11 = vadd.f32 %v369_v9, %v364_v8 }
 0x241   :  { %v411_v19 = vpop.f32.mrf.mxu0 }
 0x242   :  { %v412_v20 = vadd.f32 %v837_v18, %v411_v19  ;;  %v572_v19 = vld [vmem:[#allocation14 + $0x178] sm:$0xff] }
 0x243   :  { %578 = vmatpush.msrb.mxu2 %v572_v19  ;;  %v663_v19 = vld [vmem:[#allocation14 + $0x1e8] sm:$0xff] }
 0x244   :  { %414 = vadd.xlane.f32.xlu0 %v412_v20  ;;  %v416_v21 = vmul.f32 %v412_v20, %v412_v20 }
 0x246   :  { %417 = vadd.xlane.f32.xlu1 %v416_v21 }
 0x2b7   :  { %v415_v22 = vpop.xlane.xlu0 %414 }
 0x2b8   :  { %v419_v23 = vmul.f32 0.0078125, %v415_v22 }
 0x2b9   :  { %v418_v24 = vpop.xlane.xlu1 %417 }
 0x2ba   :  { %v421_v25 = vmul.f32 %v419_v23, %v419_v23  ;;  %v420_v26 = vmul.f32 0.0078125, %v418_v24  ;;  %v423_v47 = vsub.f32 %v412_v20, %v419_v23  ;;  %v571_v20 = vld [vmem:[#allocation14 + $0x170] sm:$0xff]  ;;  %v569_v23 = vld [vmem:[#allocation14 + $0x160] sm:$0xff] }
 0x2bb   :  { %579 = vmatpush.msrb.mxu2 %v571_v20 }
 0x2bc   :  { %v422_v28 = vsub.f32 %v420_v26, %v421_v25 }
 0x2bd   :  { %580 = vmatpush.msrb.mxu2 %v570_v12  ;;  %v662_v12 = vld [vmem:[#allocation14 + $0x1e0] sm:$0xff] }
 0x2be   :  { %v424_v31 = vadd.f32 1e-05, %v422_v28 }
 0x2bf   :  { %581 = vmatpush.msrb.mxu2 %v569_v23  ;;  %v659_v23 = vld [vmem:[#allocation14 + $0x1c8] sm:$0xff] }
 0x2c0   :  { %856 = vrsqrt.f32 %v424_v31  ;;  %vm431_vm5 = vweird.f32 %v424_v31 }
 0x2c1   :  { %582 = vmatpush.msrb.mxu2 %v568_v27 }
 0x2c3   :  { %583 = vmatpush.msrb.mxu2 %v567_v29 }
 0x2c6   :  { %v857_v36 = vpop.eup %856 }
 0x2c7   :  { %v426_v37 = vmul.f32 %v857_v36, %v424_v31  ;;  %vm432_vm4 = vweird.f32 %v857_v36  ;;  %v566_v31 = vld [vmem:[#allocation14 + $0x148] sm:$0xff] }
 0x2c8   :  { %vm433_vm6 = vmor %vm431_vm5, %vm432_vm4  ;;  %584 = vmatpush.msrb.mxu2 %v566_v31 }
 0x2c9   :  { %v427_v39 = vmul.f32 %v857_v36, %v426_v37 }
 0x2ca   :  { %585 = vmatpush.msrb.mxu2 %v565_v32  ;;  %v655_v32 = vld [vmem:[#allocation14 + $0x1a8] sm:$0xff] }
 0x2cb   :  { %v428_v41 = vmul.f32 0.5, %v427_v39 }
 0x2cc   :  { %586 = vmatpush.msrb.mxu2 %v564_v33 }
 0x2cd   :  { %v429_v43 = vsub.f32 1.5, %v428_v41 }
 0x2ce   :  { %587 = vmatpush.msrb.mxu2 %v563_v34  ;;  %v654_v34 = vld [vmem:[#allocation14 + $0x1a0] sm:$0xff] }
 0x2cf   :  { %v430_v45 = vmul.f32 %v857_v36, %v429_v43 }
 0x2d1   :  { %v434_v49 = vsel %vm433_vm6, %v857_v36, %v430_v45  ;;  %v562_v36 = vld [vmem:[#allocation14 + $0x128] sm:$0xff] }
 0x2d2   :  { %v435_v52 = vmul.f32 %v434_v49, %v423_v47  ;;  %588 = vmatpush.msrb.mxu2 %v562_v36  ;;  %v841_v47 = vld [vmem:[%s1357_s11 + $0x1] ss:$0 sm:$0xff]  ;;  %v844_v36 = vld [vmem:[%s1357_s11 + $0x2] ss:$0 sm:$0xff] }
 0x2d4   :  { %v440_v54 = vmul.f32 %v838_v48, %v435_v52  ;;  %589 = vmatpush.msrb.mxu2 %v561_v38  ;;  %v557_v48 = vld [vmem:[#allocation14 + $0x100] sm:$0xff]  ;;  %v653_v38 = vld [vmem:[#allocation14 + $0x198] sm:$0xff] }
 0x2d6   :  { %v445_v56 = vadd.f32 %v839_v51, %v440_v54  ;;  %590 = vmatpush.msrb.mxu2 %v560_v40  ;;  %v842_v51 = vld [vmem:[%s1358_s12 + $0x1] ss:$0 sm:$0xff] }
 0x2d8   :  { %v447_v58 = vmin.f32 %v445_v56, 20.0  ;;  %vm446_vm8 = vcmp.gt.f32.partialorder %v445_v56, 20.0  ;;  %591 = vmatpush.msrb.mxu2 %v559_v42 }
 0x2da   :  { %v448_v59 = vmul.f32 1.442695, %v447_v58  ;;  %592 = vmatpush.msrb.mxu2 %v558_v44 }
 0x2dc   :  { %858 = vpow2.f32 %v448_v59  ;;  %593 = vmatpush.msrb.mxu2 %v557_v48 }
 0x2e2   :  { %v859_v60 = vpop.eup %858 }
 0x2e3   :  { %v450_v61 = vadd.f32 1.0, %v859_v60  ;;  %v453_v62 = vmul.f32 -0.5, %v859_v60  ;;  %v456_v0 = vand.u32 2147483647, %v859_v60 }
 0x2e5   :  { %860 = vlog2.f32 %v450_v61  ;;  %v454_v63 = vadd.f32 1.0, %v453_v62  ;;  %vm457_vm7 = vcmp.lt.f32.partialorder %v456_v0, 0.0004427343 }
 0x2e7   :  { %v455_v3 = vmul.f32 %v859_v60, %v454_v63 }
 0x2eb   :  { %v861_v1 = vpop.eup %860 }
 0x2ec   :  { %v452_v2 = vmul.f32 0.6931472, %v861_v1 }
 0x2ee   :  { %v458_v4 = vsel %vm457_vm7, %v455_v3, %v452_v2 }
 0x2ef   :  { %v459_v5 = vsel %vm446_vm8, %v445_v56, %v458_v4 }
 0x2f0   :  { %862 = vtanh.f32 %v459_v5  ;;  %v843_v5 = vld [vmem:[%s1356_s10 + $0x2] ss:$0 sm:$0xff] }
 0x2f6   :  { %v863_v10 = vpop.eup %862 }
 0x2f7   :  { %v461_v13 = vmul.f32 %v863_v10, %v445_v56 }
 0x2f9   :  { %v462_v14 = vadd.f32 %v461_v13, %v1307_v11 }
 0x2fb   :  { %501 = vmatmul.f32.vlgmr.msra.gmra.mxu1 %v462_v14 }
 0x378   :  { %v502_v16 = vpop.f32.mrf.mxu1 }
 0x379   :  { %v503_v17 = vadd.f32 %v840_v15, %v502_v16  ;;  %v665_v16 = vld [vmem:[#allocation14 + $0x1f8] sm:$0xff] }
 0x37a   :  { %671 = vmatpush.msra.mxu3 %v665_v16  ;;  %v751_v16 = vld [vmem:[#allocation16 + $0x48] sm:$0xff] }
 0x37b   :  { %505 = vadd.xlane.f32.xlu1 %v503_v17  ;;  %v507_v18 = vmul.f32 %v503_v17, %v503_v17 }
 0x37d   :  { %508 = vadd.xlane.f32.xlu2 %v507_v18  ;;  %v664_v18 = vld [vmem:[#allocation14 + $0x1f0] sm:$0xff] }
 0x37e   :  { %672 = vmatpush.msra.mxu3 %v664_v18  ;;  %v749_v18 = vld [vmem:[#allocation16 + $0x38] sm:$0xff] }
 0x380   :  { %673 = vmatpush.msra.mxu3 %v663_v19  ;;  %v748_v19 = vld [vmem:[#allocation16 + $0x30] sm:$0xff] }
 0x382   :  { %674 = vmatpush.msra.mxu3 %v662_v12  ;;  %v747_v12 = vld [vmem:[#allocation16 + $0x28] sm:$0xff] }
 0x3ee   :  { %v506_v21 = vpop.xlane.xlu1 %505 }
 0x3ef   :  { %v510_v22 = vmul.f32 0.0078125, %v506_v21  ;;  %v661_v21 = vld [vmem:[#allocation14 + $0x1d8] sm:$0xff] }
 0x3f0   :  { %v509_v24 = vpop.xlane.xlu2 %508  ;;  %675 = vmatpush.msra.mxu3 %v661_v21 }
 0x3f1   :  { %v512_v25 = vmul.f32 %v510_v22, %v510_v22  ;;  %v511_v26 = vmul.f32 0.0078125, %v509_v24  ;;  %v514_v46 = vsub.f32 %v503_v17, %v510_v22  ;;  %v660_v22 = vld [vmem:[#allocation14 + $0x1d0] sm:$0xff] }
 0x3f2   :  { %676 = vmatpush.msra.mxu3 %v660_v22  ;;  %v746_v22 = vld [vmem:[#allocation16 + $0x20] sm:$0xff] }
 0x3f3   :  { %v513_v28 = vsub.f32 %v511_v26, %v512_v25  ;;  %v658_v26 = vld [vmem:[#allocation14 + $0x1c0] sm:$0xff] }
 0x3f4   :  { %677 = vmatpush.msra.mxu3 %v659_v23 }
 0x3f5   :  { %v515_v30 = vadd.f32 1e-05, %v513_v28  ;;  %v657_v28 = vld [vmem:[#allocation14 + $0x1b8] sm:$0xff] }
 0x3f6   :  { %678 = vmatpush.msra.mxu3 %v658_v26  ;;  %v744_v26 = vld [vmem:[#allocation16 + $0x10] sm:$0xff] }
 0x3f7   :  { %864 = vrsqrt.f32 %v515_v30  ;;  %vm522_vm10 = vweird.f32 %v515_v30 }
 0x3f8   :  { %679 = vmatpush.msra.mxu3 %v657_v28  ;;  %v743_v28 = vld [vmem:[#allocation16 + $0x8] sm:$0xff] }
 0x3fd   :  { %v865_v35 = vpop.eup %864 }
 0x3fe   :  { %v517_v37 = vmul.f32 %v865_v35, %v515_v30  ;;  %vm523_vm9 = vweird.f32 %v865_v35  ;;  %v656_v30 = vld [vmem:[#allocation14 + $0x1b0] sm:$0xff] }
 0x3ff   :  { %vm524_vm11 = vmor %vm522_vm10, %vm523_vm9  ;;  %680 = vmatpush.msra.mxu3 %v656_v30 }
 0x400   :  { %v518_v39 = vmul.f32 %v865_v35, %v517_v37 }
 0x401   :  { %681 = vmatpush.msra.mxu3 %v655_v32  ;;  %v742_v32 = vld [vmem:[#allocation16] sm:$0xff] }
 0x402   :  { %v519_v41 = vmul.f32 0.5, %v518_v39  ;;  %v845_v39 = vld [vmem:[%s1358_s12 + $0x2] ss:$0 sm:$0xff] }
 0x403   :  { %682 = vmatpush.msra.mxu3 %v654_v34 }
 0x404   :  { %v520_v43 = vsub.f32 1.5, %v519_v41  ;;  %v652_v41 = vld [vmem:[#allocation14 + $0x190] sm:$0xff] }
 0x405   :  { %683 = vmatpush.msra.mxu3 %v653_v38 }
 0x406   :  { %v521_v45 = vmul.f32 %v865_v35, %v520_v43  ;;  %v651_v43 = vld [vmem:[#allocation14 + $0x188] sm:$0xff] }
 0x407   :  { %684 = vmatpush.msra.mxu3 %v652_v41 }
 0x408   :  { %v525_v49 = vsel %vm524_vm11, %v865_v35, %v521_v45  ;;  %v650_v45 = vld [vmem:[#allocation14 + $0x180] sm:$0xff] }
 0x409   :  { %v526_v50 = vmul.f32 %v525_v49, %v514_v46  ;;  %685 = vmatpush.msra.mxu3 %v651_v43 }
 0x40b   :  { %v532_v52 = vmul.f32 %v841_v47, %v526_v50  ;;  %686 = vmatpush.msra.mxu3 %v650_v45 }
 0x40d   :  { %v538_v53 = vadd.f32 %v842_v51, %v532_v52 }
 0x40f   :  { %v540_v54 = vmin.f32 %v538_v53, 20.0  ;;  %vm539_vm13 = vcmp.gt.f32.partialorder %v538_v53, 20.0 }
 0x411   :  { %v541_v55 = vmul.f32 1.442695, %v540_v54 }
 0x413   :  { %866 = vpow2.f32 %v541_v55 }
 0x419   :  { %v867_v56 = vpop.eup %866 }
 0x41a   :  { %v543_v57 = vadd.f32 1.0, %v867_v56  ;;  %v546_v58 = vmul.f32 -0.5, %v867_v56  ;;  %v549_v60 = vand.u32 2147483647, %v867_v56 }
 0x41c   :  { %868 = vlog2.f32 %v543_v57  ;;  %v547_v59 = vadd.f32 1.0, %v546_v58  ;;  %vm550_vm12 = vcmp.lt.f32.partialorder %v549_v60, 0.0004427343 }
 0x41e   :  { %v548_v63 = vmul.f32 %v867_v56, %v547_v59 }
 0x422   :  { %v869_v61 = vpop.eup %868 }
 0x423   :  { %v545_v62 = vmul.f32 0.6931472, %v869_v61  ;;  %v846_v61 = vld [vmem:[%s1356_s10 + $0x3] ss:$0 sm:$0xff] }
 0x425   :  { %v551_v0 = vsel %vm550_vm12, %v548_v63, %v545_v62 }
 0x426   :  { %v552_v1 = vsel %vm539_vm13, %v538_v53, %v551_v0 }
 0x427   :  { %870 = vtanh.f32 %v552_v1  ;;  %v757_v1 = vld [vmem:[#allocation16 + $0x78] sm:$0xff] }
 0x428   :  { %762 = vmatpush.msrb.mxu0 %v757_v1 }
 0x42d   :  { %v871_v2 = vpop.eup %870 }
 0x42e   :  { %v554_v3 = vmul.f32 %v871_v2, %v538_v53  ;;  %v756_v2 = vld [vmem:[#allocation16 + $0x70] sm:$0xff] }
 0x42f   :  { %763 = vmatpush.msrb.mxu0 %v756_v2 }
 0x430   :  { %v555_v4 = vadd.f32 %v554_v3, %v1307_v11  ;;  %v755_v3 = vld [vmem:[#allocation16 + $0x68] sm:$0xff] }
 0x431   :  { %764 = vmatpush.msrb.mxu0 %v755_v3 }
 0x432   :  { %594 = vmatmul.f32.vlgmr.msrb.gmra.mxu2 %v555_v4 }
 0x4b5   :  { %v595_v6 = vpop.f32.mrf.mxu2 }
 0x4b6   :  { %v596_v7 = vadd.f32 %v843_v5, %v595_v6  ;;  %v754_v6 = vld [vmem:[#allocation16 + $0x60] sm:$0xff] }
 0x4b7   :  { %765 = vmatpush.msrb.mxu0 %v754_v6 }
 0x4b8   :  { %598 = vadd.xlane.f32.xlu2 %v596_v7  ;;  %v600_v8 = vmul.f32 %v596_v7, %v596_v7 }
 0x4ba   :  { %601 = vadd.xlane.f32.xlu1 %v600_v8 }
 0x52b   :  { %v599_v9 = vpop.xlane.xlu2 %598 }
 0x52c   :  { %v603_v10 = vmul.f32 0.0078125, %v599_v9 }
 0x52d   :  { %v602_v13 = vpop.xlane.xlu1 %601 }
 0x52e   :  { %v605_v14 = vmul.f32 %v603_v10, %v603_v10  ;;  %v604_v15 = vmul.f32 0.0078125, %v602_v13  ;;  %v607_v35 = vsub.f32 %v596_v7, %v603_v10  ;;  %v753_v10 = vld [vmem:[#allocation16 + $0x58] sm:$0xff] }
 0x52f   :  { %766 = vmatpush.msrb.mxu0 %v753_v10 }
 0x530   :  { %v606_v17 = vsub.f32 %v604_v15, %v605_v14  ;;  %v752_v14 = vld [vmem:[#allocation16 + $0x50] sm:$0xff] }
 0x531   :  { %767 = vmatpush.msrb.mxu0 %v752_v14 }
 0x532   :  { %v608_v20 = vadd.f32 1e-05, %v606_v17  ;;  %v750_v17 = vld [vmem:[#allocation16 + $0x40] sm:$0xff] }
 0x533   :  { %768 = vmatpush.msrb.mxu0 %v751_v16 }
 0x534   :  { %872 = vrsqrt.f32 %v608_v20  ;;  %vm615_vm15 = vweird.f32 %v608_v20 }
 0x535   :  { %769 = vmatpush.msrb.mxu0 %v750_v17 }
 0x537   :  { %770 = vmatpush.msrb.mxu0 %v749_v18 }
 0x539   :  { %771 = vmatpush.msrb.mxu0 %v748_v19 }
 0x53a   :  { %v873_v24 = vpop.eup %872 }
 0x53b   :  { %v610_v25 = vmul.f32 %v873_v24, %v608_v20  ;;  %vm616_vm14 = vweird.f32 %v873_v24  ;;  %772 = vmatpush.msrb.mxu0 %v747_v12 }
 0x53c   :  { %vm617_vm0 = vmor %vm615_vm15, %vm616_vm14 }
 0x53d   :  { %v611_v27 = vmul.f32 %v873_v24, %v610_v25  ;;  %773 = vmatpush.msrb.mxu0 %v746_v22 }
 0x53f   :  { %v612_v29 = vmul.f32 0.5, %v611_v27 }
 0x541   :  { %v613_v31 = vsub.f32 1.5, %v612_v29 }
 0x543   :  { %v614_v33 = vmul.f32 %v873_v24, %v613_v31  ;;  %v847_v31 = vld [vmem:[%s1357_s11 + $0x3] ss:$0 sm:$0xff] }
 0x545   :  { %v618_v37 = vsel %vm617_vm0, %v873_v24, %v614_v33  ;;  %v745_v24 = vld [vmem:[#allocation16 + $0x18] sm:$0xff] }
 0x546   :  { %v619_v40 = vmul.f32 %v618_v37, %v607_v35  ;;  %774 = vmatpush.msrb.mxu0 %v745_v24  ;;  %v848_v35 = vld [vmem:[%s1358_s12 + $0x3] ss:$0 sm:$0xff] }
 0x548   :  { %v625_v42 = vmul.f32 %v844_v36, %v619_v40  ;;  %775 = vmatpush.msrb.mxu0 %v744_v26 }
 0x54a   :  { %v631_v44 = vadd.f32 %v845_v39, %v625_v42  ;;  %776 = vmatpush.msrb.mxu0 %v743_v28 }
 0x54c   :  { %v633_v46 = vmin.f32 %v631_v44, 20.0  ;;  %vm632_vm2 = vcmp.gt.f32.partialorder %v631_v44, 20.0  ;;  %777 = vmatpush.msrb.mxu0 %v742_v32 }
 0x54e   :  { %v634_v47 = vmul.f32 1.442695, %v633_v46 }
 0x550   :  { %874 = vpow2.f32 %v634_v47 }
 0x556   :  { %v875_v48 = vpop.eup %874 }
 0x557   :  { %v636_v49 = vadd.f32 1.0, %v875_v48  ;;  %v639_v50 = vmul.f32 -0.5, %v875_v48  ;;  %v642_v52 = vand.u32 2147483647, %v875_v48 }
 0x559   :  { %876 = vlog2.f32 %v636_v49  ;;  %v640_v51 = vadd.f32 1.0, %v639_v50  ;;  %vm643_vm1 = vcmp.lt.f32.partialorder %v642_v52, 0.0004427343 }
 0x55b   :  { %v641_v55 = vmul.f32 %v875_v48, %v640_v51 }
 0x55f   :  { %v877_v53 = vpop.eup %876 }
 0x560   :  { %v638_v54 = vmul.f32 0.6931472, %v877_v53  ;;  %v849_v53 = vld [vmem:[%s1360_s14] ss:$0 sm:$0xff] }
 0x562   :  { %v644_v56 = vsel %vm643_vm1, %v641_v55, %v638_v54 }
 0x563   :  { %v645_v57 = vsel %vm632_vm2, %v631_v44, %v644_v56 }
 0x564   :  { %878 = vtanh.f32 %v645_v57 }
 0x56a   :  { %v879_v58 = vpop.eup %878 }
 0x56b   :  { %v647_v59 = vmul.f32 %v879_v58, %v631_v44 }
 0x56d   :  { %v648_v60 = vadd.f32 %v647_v59, %v1307_v11 }
 0x56f   :  { %687 = vmatmul.f32.vlgmr.msra.gmra.mxu3 %v648_v60 }
 0x5f2   :  { %v688_v62 = vpop.f32.mrf.mxu3 }
 0x5f3   :  { %v689_v63 = vadd.f32 %v846_v61, %v688_v62 }
 0x5f5   :  { %691 = vadd.xlane.f32.xlu2 %v689_v63  ;;  %v693_v0 = vmul.f32 %v689_v63, %v689_v63 }
 0x5f7   :  { %694 = vadd.xlane.f32.xlu1 %v693_v0 }
 0x668   :  { %v692_v4 = vpop.xlane.xlu2 %691 }
 0x669   :  { %v696_v5 = vmul.f32 0.0078125, %v692_v4 }
 0x66a   :  { %v695_v7 = vpop.xlane.xlu1 %694 }
 0x66b   :  { %v698_v8 = vmul.f32 %v696_v5, %v696_v5  ;;  %v697_v9 = vmul.f32 0.0078125, %v695_v7  ;;  %v700_v30 = vsub.f32 %v689_v63, %v696_v5 }
 0x66d   :  { %v699_v13 = vsub.f32 %v697_v9, %v698_v8 }
 0x66f   :  { %v701_v15 = vadd.f32 1e-05, %v699_v13 }
 0x671   :  { %880 = vrsqrt.f32 %v701_v15  ;;  %vm708_vm4 = vweird.f32 %v701_v15 }
 0x677   :  { %v881_v20 = vpop.eup %880 }
 0x678   :  { %v703_v21 = vmul.f32 %v881_v20, %v701_v15  ;;  %vm709_vm3 = vweird.f32 %v881_v20 }
 0x679   :  { %vm710_vm5 = vmor %vm708_vm4, %vm709_vm3 }
 0x67a   :  { %v704_v23 = vmul.f32 %v881_v20, %v703_v21 }
 0x67c   :  { %v705_v25 = vmul.f32 0.5, %v704_v23 }
 0x67e   :  { %v706_v27 = vsub.f32 1.5, %v705_v25 }
 0x680   :  { %v707_v29 = vmul.f32 %v881_v20, %v706_v27 }
 0x682   :  { %v711_v33 = vsel %vm710_vm5, %v881_v20, %v707_v29 }
 0x683   :  { %v712_v34 = vmul.f32 %v711_v33, %v700_v30 }
 0x685   :  { %v718_v36 = vmul.f32 %v847_v31, %v712_v34 }
 0x687   :  { %v724_v37 = vadd.f32 %v848_v35, %v718_v36 }
 0x689   :  { %v726_v38 = vmin.f32 %v724_v37, 20.0  ;;  %vm725_vm7 = vcmp.gt.f32.partialorder %v724_v37, 20.0 }
 0x68b   :  { %v727_v39 = vmul.f32 1.442695, %v726_v38 }
 0x68d   :  { %882 = vpow2.f32 %v727_v39 }
 0x693   :  { %v883_v40 = vpop.eup %882 }
 0x694   :  { %v729_v41 = vadd.f32 1.0, %v883_v40  ;;  %v732_v42 = vmul.f32 -0.5, %v883_v40  ;;  %v735_v44 = vand.u32 2147483647, %v883_v40 }
 0x696   :  { %884 = vlog2.f32 %v729_v41  ;;  %v733_v43 = vadd.f32 1.0, %v732_v42  ;;  %vm736_vm6 = vcmp.lt.f32.partialorder %v735_v44, 0.0004427343 }
 0x698   :  { %v734_v47 = vmul.f32 %v883_v40, %v733_v43 }
 0x69c   :  { %v885_v45 = vpop.eup %884 }
 0x69d   :  { %v731_v46 = vmul.f32 0.6931472, %v885_v45 }
 0x69f   :  { %v737_v48 = vsel %vm736_vm6, %v734_v47, %v731_v46 }
 0x6a0   :  { %v738_v49 = vsel %vm725_vm7, %v724_v37, %v737_v48 }
 0x6a1   :  { %886 = vtanh.f32 %v738_v49 }
 0x6a7   :  { %v887_v50 = vpop.eup %886 }
 0x6a8   :  { %v740_v51 = vmul.f32 %v887_v50, %v724_v37 }
 0x6aa   :  { %v741_v52 = vadd.f32 %v740_v51, %v1307_v11 }
 0x6ac   :  { %778 = vmatmul.f32.vlgmr.msrb.gmra.mxu0 %v741_v52 }
 0x729   :  { %v779_v54 = vpop.f32.mrf.mxu0 }
 0x72a   :  { %v780_v55 = vadd.f32 %v849_v53, %v779_v54 }
 0x72c   :  { %782 = vst [vmem:[#allocation17] sm:$0xff] %v780_v55 }
 0x72d   :  { %793 = dma.vmem_to_hbm [thread:$0]  %s789_s0, 128, %s791_s18, [#allocation4]  }
 0x72e   :  { %1138 = dma.done.wait [#allocation4], 128  }
 0x72f   :  { %1139 = vsyncadd [#allocation4], 4294967168 }
 0x730   :  { %798 = vsyncpa [#allocation3], 1 }
 0x731   :  { %799 = vsyncpa [#allocation6], 1 }
 0x732   :  { %800 = vsyncpa [#allocation9], 1 }
 0x733   :  { %801 = vsyncpa [#allocation12], 1 }
 0x734   :  { %802 = vsyncpa [#allocation15], 1 }
 0x735   :  { %803 = vsyncpa [#allocation4], 1 }

</bundles_post_ra>
